<compile_context>
chip_gen: v5e
topology: v5e:2x2
jax: 0.10.0
libtpu: 0.0.40
codegen_flags: <defaults>
</compile_context>

<pallas_src>
import jax
import jax.numpy as jnp
from jax.experimental import pallas as pl
from jax.experimental.pallas import tpu as pltpu


_ROW_CHUNK = 128                    # batch rows reduced per inner-loop step
_TARGET_TILE_BYTES = 2 * 1024 * 1024  # ~2 MiB input tile per grid step


def _consensus_avg_kernel(x_ref, o_ref):
    """x_ref: (BN, T, C) VMEM tile; o_ref: (BN, C) VMEM tile."""
    bn, t, _ = x_ref.shape
    inv_t = 1.0 / t

    def reduce_rows(start, nrows):
        x = x_ref[pl.ds(start, nrows), :, :]
        if x.dtype != jnp.float32:
            # f32 accumulate for low-precision inputs (bf16 etc.); no-op for f32.
            x = x.astype(jnp.float32)
        s = jnp.sum(x, axis=1) * inv_t              # reduce over the segment axis
        o_ref[pl.ds(start, nrows), :] = s.astype(o_ref.dtype)

    # Chunk the row axis so we never materialize a multi-MiB tile in vregs.
    chunk = min(bn, _ROW_CHUNK)
    n_full = bn // chunk
    rem = bn - n_full * chunk

    if n_full == 1:
        reduce_rows(0, chunk)
    else:
        def body(i, carry):
            start = pl.multiple_of(i * chunk, chunk)
            reduce_rows(start, chunk)
            return carry

        jax.lax.fori_loop(0, n_full, body, 0, unroll=(n_full <= 16))

    if rem:
        reduce_rows(n_full * chunk, rem)


def _choose_block_rows(n, t, c, itemsize):
    """Pick BN (batch rows per grid step) targeting ~2 MiB input tiles."""
    row_bytes = max(1, t * c * itemsize)
    bn = max(1, _TARGET_TILE_BYTES // row_bytes)
    if bn >= n:
        # Whole problem fits in one tile. Split into two blocks when that keeps
        # the output block's sublane dim a multiple of 8, so v7x's two
        # TensorCores (grid >= 2 parallel steps) both get work.
        if n % 16 == 0:
            return n // 2
        return n
    # Large N: multiple-of-_ROW_CHUNK blocks keep the output block sublane-aligned
    # and the in-kernel chunk loop uniform; last partial grid block is padded.
    bn = max(_ROW_CHUNK, (bn // _ROW_CHUNK) * _ROW_CHUNK)
    return min(bn, n)


def segment_consensus(x, consensus_type="avg", dim=1):
    """Pallas implementation of SegmentConsensus.forward for (N, T, C) inputs."""
    if consensus_type == "identity":
        # PyTorch identity consensus returns the tensor unchanged: no kernel,
        # no HBM read/write.
        return x
    if consensus_type != "avg":
        # Matches PyTorch behavior: unknown consensus_type returns None.
        return None
    if dim != 1:
        # TODO(synk): only the default dim=1 (segment axis) is supported in-kernel.
        raise NotImplementedError("segment_consensus kernel supports dim=1 only")

    N, T, C = x.shape
    itemsize = jnp.dtype(x.dtype).itemsize
    bn = _choose_block_rows(N, T, C, itemsize)
    grid = (pl.cdiv(N, bn),)

    cost = pl.CostEstimate(
        flops=N * T * C,
        transcendentals=0,
        bytes_accessed=N * T * C * itemsize + N * C * itemsize,
    )

    out2d = pl.pallas_call(
        _consensus_avg_kernel,
        out_shape=jax.ShapeDtypeStruct((N, C), x.dtype),
        grid_spec=pltpu.PrefetchScalarGridSpec(
            num_scalar_prefetch=0,
            grid=grid,
            in_specs=[pl.BlockSpec((bn, T, C), lambda i: (i, 0, 0))],
            out_specs=pl.BlockSpec((bn, C), lambda i: (i, 0)),
        ),
        compiler_params=pltpu.CompilerParams(
            dimension_semantics=("parallel",),
        ),
        cost_estimate=cost,
    )(x)
    # keepdim=True: the (N, 1, C) reshape is free outside the kernel.
    return out2d.reshape(N, 1, C)


if __name__ == "__main__":
    key = jax.random.PRNGKey(0)

    # Small demo shape: batch=2, num_segments=8, num_classes=32.
    N, T, C = 2, 8, 32
    x = jax.random.normal(key, (N, T, C), dtype=jnp.float32)

    # 'avg' consensus (the hot path).
    out_avg = jax.block_until_ready(segment_consensus(x, consensus_type="avg", dim=1))
    ref_avg = jnp.mean(x, axis=1, keepdims=True)
    assert out_avg.shape == (N, 1, C)
    assert jnp.allclose(out_avg, ref_avg, atol=1e-5, rtol=1e-5)

    # 'identity' consensus: returned unchanged (no kernel launched).
    out_id = segment_consensus(x, consensus_type="identity", dim=1)
    assert out_id.shape == x.shape
    assert jnp.allclose(out_id, x)

    # Exercise the multi-grid-step / multi-chunk path with a larger batch.
    key2 = jax.random.PRNGKey(0)
    N2 = 160
    x2 = jax.random.normal(key2, (N2, T, C), dtype=jnp.float32)
    out2 = jax.block_until_ready(segment_consensus(x2, consensus_type="avg", dim=1))
    ref2 = jnp.mean(x2, axis=1, keepdims=True)
    assert out2.shape == (N2, 1, C)
    assert jnp.allclose(out2, ref2, atol=1e-5, rtol=1e-5)

    # bf16 input: f32 accumulate inside the kernel, cast back on store.
    x3 = x.astype(jnp.bfloat16)
    out3 = jax.block_until_ready(segment_consensus(x3, consensus_type="avg", dim=1))
    ref3 = jnp.mean(x3.astype(jnp.float32), axis=1, keepdims=True).astype(jnp.bfloat16)
    assert jnp.allclose(out3.astype(jnp.float32), ref3.astype(jnp.float32),
                        atol=2e-2, rtol=2e-2)

    print("KERNEL_OK")
</pallas_src>

<mosaic_0001>
module attributes {stable_mosaic.version = 11 : i64} {
  func.func @_consensus_avg_kernel(%arg0: i32, %arg1: memref<2x8x32xf32, #tpu.memory_space<vmem>>, %arg2: memref<2x32xf32, #tpu.memory_space<vmem>>) attributes {dimension_semantics = [#tpu.dimension_semantics<parallel>], iteration_bounds = array<i64: 1>, scalar_prefetch = 0 : i64, scratch_operands = 0 : i64, tpu.core_type = #tpu.core_type<tc>, window_params = [{transform_indices = @transform_0, window_bounds = array<i64: 2, 8, 32>}, {transform_indices = @transform_1, window_bounds = array<i64: 2, 32>}]} {
    %c0 = arith.constant 0 : index
    %c0_0 = arith.constant 0 : index
    %c0_1 = arith.constant 0 : index
    %0 = vector.load %arg1[%c0, %c0_0, %c0_1] : memref<2x8x32xf32, #tpu.memory_space<vmem>>, vector<2x8x32xf32>
    %cst = arith.constant dense<0.000000e+00> : vector<2x32xf32>
    %1 = vector.multi_reduction <add>, %0, %cst [1] : vector<2x8x32xf32> to vector<2x32xf32>
    %cst_2 = arith.constant 1.250000e-01 : f32
    %2 = vector.broadcast %cst_2 : f32 to vector<2x32xf32>
    %3 = arith.mulf %1, %2 : vector<2x32xf32>
    %c0_3 = arith.constant 0 : index
    %c0_4 = arith.constant 0 : index
    %4 = vector.load %arg2[%c0_3, %c0_4] : memref<2x32xf32, #tpu.memory_space<vmem>>, vector<2x32xf32>
    tpu.vector_store %arg2[%c0_3, %c0_4], %3 {strides = array<i32>} : memref<2x32xf32, #tpu.memory_space<vmem>>, vector<2x32xf32>,
    return
  }
  func.func @transform_0(%arg0: i32) -> (i32, i32, i32) {
    %c0_i32 = arith.constant 0 : i32
    %c0_i32_0 = arith.constant 0 : i32
    %c0_i32_1 = arith.constant 0 : i32
    return %arg0, %c0_i32, %c0_i32_0 : i32, i32, i32
  }
  func.func @transform_1(%arg0: i32) -> (i32, i32) {
    %c0_i32 = arith.constant 0 : i32
    %c0_i32_0 = arith.constant 0 : i32
    return %arg0, %c0_i32 : i32, i32
  }
}

</mosaic_0001>

<bundles_post_ra>
// kernel: tpu_custom_call.1
= control target key start
LH: loop header
LB: loop body
LE: loop exit
PB: predicated region body
PF: predicated region fallthrough
CT: control target
= control target key end

     0   :  { %6 = vsyncpa [#allocation3], 0  ;;  %s144_s0 = inlined_call_operand.hbm [shape: f32[2,8,32], index: 0, kind: input, shape index: {}]   ;;  %s145_s1 = inlined_call_operand.hbm [shape: f32[2,32], index: 1, kind: output, shape index: {}]  }
   0x1   :  { %7 = vsyncpa [#allocation4], 0  ;;  %s12_s8 = sshll.u32 %s144_s0, 4  ;;  %s124_s9 = smov [#allocation2]   ;;  %s13_s8 = int_to_ptr.hbm [resolvable:$true] %s12_s8 }
   0x2   :  { %s14_s10 = sshll.u32 %s124_s9, 4  ;;  %s125_s11 = smov 128   ;;  %s15_s10 = int_to_ptr.vmem [resolvable:$true] %s14_s10 }
   0x3   :  { %s126_s12 = smov 8  }
   0x4   :  { %20 = dma.hbm_to_vmem [thread:$0]  %s13_s8, 256, %s15_s10, [#allocation3], %s125_s11, %s125_s11, %s126_s12  }
   0x5   :  { %120 = dma.done.wait [#allocation3], 256  }
   0x6   :  { %121 = vsyncadd [#allocation3], 4294967040  ;;  %vm27_vm0 = vcmask 261120   ;;  %v25_v0 = vld [vmem:[#allocation2] sm:$0xff]  ;;  %v26_v1 = vld [vmem:[#allocation2 + $0x8] sm:$0xff]  ;;  %s127_s0 = smov [#allocation5]  }
   0x7   :  { %v28_v2 = vsel %vm27_vm0, %v25_v0, 0.0  ;;  %v35_v3 = vsel %vm27_vm0, %v26_v1, 0.0  ;;  %s56_s13 = sshll.u32 %s127_s0, 4  ;;  %s58_s16 = sshll.u32 %s145_s1, 4  ;;  %vm46_vm1 = vcmask 1041409   ;;  %vm49_vm2 = vcmask 254976   ;;  %s57_s13 = int_to_ptr.vmem [resolvable:$true] %s56_s13  ;;  %s59_s16 = int_to_ptr.hbm [resolvable:$true] %s58_s16 }
   0x8   :  { %v29_v4 = vrot.slane %v28_v2, 4  ;;  %v36_v5 = vrot.slane %v35_v3, 4 }
   0xa   :  { %v30_v6 = vadd.f32 %v29_v4, %v28_v2  ;;  %v37_v7 = vadd.f32 %v36_v5, %v35_v3 }
   0xc   :  { %v31_v8 = vrot.slane %v30_v6, 2  ;;  %v38_v9 = vrot.slane %v37_v7, 2 }
   0xe   :  { %v32_v10 = vadd.f32 %v31_v8, %v30_v6  ;;  %v39_v11 = vadd.f32 %v38_v9, %v37_v7 }
  0x10   :  { %v33_v12 = vrot.slane %v32_v10, 1  ;;  %v40_v13 = vrot.slane %v39_v11, 1 }
  0x12   :  { %v34_v14 = vadd.f32 %v33_v12, %v32_v10  ;;  %v41_v15 = vadd.f32 %v40_v13, %v39_v11 }
  0x14   :  { %v42_v16 = vmul.f32 0.125, %v34_v14  ;;  %v43_v17 = vmul.f32 0.125, %v41_v15 }
  0x16   :  { %v47_v18 = vsel %vm46_vm1, %v43_v17, %v42_v16 }
  0x17   :  { %50 = vst.msk [vmem:[#allocation5] sm:$0x3] %vm49_vm2, %v47_v18 }
  0x18   :  { %61 = dma.vmem_to_hbm [thread:$0]  %s57_s13, 32, %s59_s16, [#allocation4]  }
  0x19   :  { %122 = dma.done.wait [#allocation4], 32  }
  0x1a   :  { %123 = vsyncadd [#allocation4], 4294967264 }
  0x1b   :  { %66 = vsyncpa [#allocation3], 1 }
  0x1c   :  { %67 = vsyncpa [#allocation4], 1 }

</bundles_post_ra>
